<compile_context>
chip_gen: v5e
topology: v5e:2x2
jax: 0.10.0
libtpu: 0.0.40
codegen_flags: <defaults>
</compile_context>

<pallas_src>
import functools

import jax
import jax.numpy as jnp
from jax.experimental import pallas as pl
from jax.experimental.pallas import tpu as pltpu


def _cbam_kernel(x_ref, w1t_ref, w2t_ref, wc_ref, o_ref, *,
                 Bt, C, H, W, K, conv_as_matmul):
    HW = H * W
    x = x_ref[...].astype(jnp.float32)                       # (Bt, C, HW)

    # ---------------- channel attention ----------------
    avg_c = jnp.sum(x, axis=2) * (1.0 / float(HW))           # (Bt, C)  lane reduce
    max_c = jnp.max(x, axis=2)                               # (Bt, C)
    pooled = jnp.concatenate([avg_c, max_c], axis=0)         # (2*Bt, C)

    h = jnp.dot(pooled, w1t_ref[...], preferred_element_type=jnp.float32)
    h = jnp.maximum(h, 0.0)                                  # ReLU
    fc = jnp.dot(h, w2t_ref[...], preferred_element_type=jnp.float32)   # (2*Bt, C)

    ca = jax.nn.sigmoid(fc[:Bt, :] + fc[Bt:, :])             # (Bt, C)
    x1 = x * ca[:, :, None]                                  # (Bt, C, HW)

    # ---------------- spatial attention ----------------
    avg_sp = jnp.mean(x1, axis=1)                            # (Bt, HW) sublane reduce
    max_sp = jnp.max(x1, axis=1)                             # (Bt, HW)

    if conv_as_matmul:
        # 7x7 "SAME" conv as one matmul against the precomputed conv matrix.
        sp = jnp.concatenate([avg_sp, max_sp], axis=1)       # (Bt, 2*HW) lane concat
        conv = jnp.dot(sp, wc_ref[...],
                       preferred_element_type=jnp.float32)   # (Bt, HW)
    else:
        # Fallback for large HW: 49 static shifted-window FMAs in registers.
        pad = (K - 1) // 2
        a_sp = avg_sp.reshape(Bt, H, W)
        m_sp = max_sp.reshape(Bt, H, W)

        def zpad(m):
            if pad == 0:
                return m
            zw = jnp.zeros((Bt, H, pad), jnp.float32)
            m = jnp.concatenate([zw, m, zw], axis=2)         # (Bt, H, W+2p)
            zh = jnp.zeros((Bt, pad, W + 2 * pad), jnp.float32)
            return jnp.concatenate([zh, m, zh], axis=1)      # (Bt, H+2p, W+2p)

        a_pad = zpad(a_sp)
        m_pad = zpad(m_sp)
        acc = jnp.zeros((Bt, H, W), jnp.float32)
        for ki in range(K):
            for kj in range(K):
                wa = wc_ref[ki * K + kj]                     # avg-channel weight
                wm = wc_ref[K * K + ki * K + kj]             # max-channel weight
                acc = (acc
                       + a_pad[:, ki:ki + H, kj:kj + W] * wa
                       + m_pad[:, ki:ki + H, kj:kj + W] * wm)
        conv = acc.reshape(Bt, HW)

    sa = jax.nn.sigmoid(conv)[:, None, :]                    # (Bt, 1, HW)
    o_ref[...] = (x1 * sa).astype(o_ref.dtype)


def _conv_as_matrix(wconv, H, W, K):
    """Unroll a KxK 'SAME' conv (2 -> 1 channels, no bias) into a (2*H*W, H*W)
    matrix so the in-kernel spatial conv is a single MXU matmul."""
    pad = (K - 1) // 2
    w = jnp.asarray(wconv, jnp.float32)                      # (1, 2, K, K)
    dy = jnp.arange(H)[:, None] - jnp.arange(H)[None, :] + pad   # in_row - out_row + p
    dx = jnp.arange(W)[:, None] - jnp.arange(W)[None, :] + pad   # in_col - out_col + p
    vy = (dy >= 0) & (dy < K)
    vx = (dx >= 0) & (dx < K)
    dyc = jnp.clip(dy, 0, K - 1)
    dxc = jnp.clip(dx, 0, K - 1)
    valid = vy[:, None, :, None] & vx[None, :, None, :]      # (H, W, H, W)

    def one_channel(w_kk):                                   # (K, K) -> (HW, HW)
        taps = w_kk[dyc[:, None, :, None], dxc[None, :, None, :]]  # (H, W, H, W)
        return jnp.where(valid, taps, 0.0).reshape(H * W, H * W)

    return jnp.concatenate([one_channel(w[0, 0]), one_channel(w[0, 1])], axis=0)


def _pick_block_b(B, C, HW, budget_bytes=16 << 20):
    """Largest divisor of B whose ~5x-f32 working set fits the VMEM budget,
    preferring >= 2 grid steps so both TCs on a v7x chip are used."""
    slab = C * HW * 4
    cap = max(1, budget_bytes // (5 * slab))
    best = 1
    for d in range(1, B + 1):
        if B % d != 0 or d > cap:
            continue
        if B // d >= 2 or B == 1:
            best = max(best, d)
    return best


def cbam_pallas(x, w1, w2, wconv, block_b=None):
    """x: (B, C, H, W); w1: (C//r, C); w2: (C, C//r); wconv: (1, 2, K, K)."""
    B, C, H, W = x.shape
    HW = H * W
    K = wconv.shape[-1]
    hidden = w1.shape[0]

    if block_b is None:
        block_b = _pick_block_b(B, C, HW)
    assert B % block_b == 0, (B, block_b)

    x_flat = x.reshape(B, C, HW)                             # lane-dense layout
    w1t = jnp.asarray(w1, jnp.float32).T                     # (C, hidden)
    w2t = jnp.asarray(w2, jnp.float32).T                     # (hidden, C)

    # Use the matmul form of the conv whenever the (2*HW, HW) matrix is small
    # (<= 4 MiB); otherwise fall back to the shifted-window tap loop.
    conv_as_matmul = 2 * HW * HW * 4 <= (4 << 20)
    if conv_as_matmul:
        wc_arg = _conv_as_matrix(wconv, H, W, K)             # (2*HW, HW) f32, VMEM
        wc_spec = pl.BlockSpec((2 * HW, HW), lambda b: (0, 0))
    else:
        wc_arg = jnp.asarray(wconv, jnp.float32).reshape(-1)  # (2*K*K,) -> SMEM
        wc_spec = pl.BlockSpec(memory_space=pltpu.MemorySpace.SMEM)

    kernel = functools.partial(_cbam_kernel, Bt=block_b, C=C, H=H, W=W, K=K,
                               conv_as_matmul=conv_as_matmul)
    out_flat = pl.pallas_call(
        kernel,
        out_shape=jax.ShapeDtypeStruct((B, C, HW), x.dtype),
        grid=(B // block_b,),
        in_specs=[
            pl.BlockSpec((block_b, C, HW), lambda b: (b, 0, 0)),
            pl.BlockSpec((C, hidden), lambda b: (0, 0)),
            pl.BlockSpec((hidden, C), lambda b: (0, 0)),
            wc_spec,
        ],
        out_specs=pl.BlockSpec((block_b, C, HW), lambda b: (b, 0, 0)),
        compiler_params=pltpu.CompilerParams(
            dimension_semantics=("parallel",),
        ),
    )(x_flat, w1t, w2t, wc_arg)
    return out_flat.reshape(B, C, H, W)


def cbam_ref(x, w1, w2, wconv):
    """Pure-JAX reference matching the PyTorch module semantics (NCHW)."""
    avg = x.mean(axis=(2, 3))                                # (B, C)
    mx = x.max(axis=(2, 3))                                  # (B, C)

    def fc(v):
        return jnp.maximum(v @ w1.T, 0.0) @ w2.T

    ca = jax.nn.sigmoid(fc(avg) + fc(mx))[:, :, None, None]
    x1 = x * ca
    avg_sp = x1.mean(axis=1, keepdims=True)
    max_sp = x1.max(axis=1, keepdims=True)
    sp_in = jnp.concatenate([avg_sp, max_sp], axis=1)        # (B, 2, H, W)
    conv = jax.lax.conv_general_dilated(
        sp_in, wconv, window_strides=(1, 1), padding="SAME",
        dimension_numbers=("NCHW", "OIHW", "NCHW"))
    return x1 * jax.nn.sigmoid(conv)


if __name__ == "__main__":
    B, C, H, W = 2, 32, 16, 16
    reduction, K = 16, 7
    hidden = C // reduction

    key = jax.random.PRNGKey(0)
    kx, k1, k2, kc = jax.random.split(key, 4)
    x = jax.random.normal(kx, (B, C, H, W), jnp.float32)
    # deterministic synthetic weights (shapes per the module's __init__)
    w1 = jax.random.normal(k1, (hidden, C), jnp.float32) * 0.2     # Linear(C -> C//r), no bias
    w2 = jax.random.normal(k2, (C, hidden), jnp.float32) * 0.2     # Linear(C//r -> C), no bias
    wconv = jax.random.normal(kc, (1, 2, K, K), jnp.float32) * 0.1 # Conv2d(2 -> 1, 7x7), no bias

    out = jax.block_until_ready(cbam_pallas(x, w1, w2, wconv))

    ref = cbam_ref(x, w1, w2, wconv)
    max_err = float(jnp.max(jnp.abs(out - ref)))
    assert jnp.allclose(out, ref, rtol=1e-4, atol=1e-4), f"max abs err = {max_err}"

    print("KERNEL_OK")
</pallas_src>

<mosaic_0001>
module attributes {stable_mosaic.version = 11 : i64} {
  func.func @_cbam_kernel(%arg0: i32, %arg1: memref<1x32x256xf32, #tpu.memory_space<vmem>>, %arg2: memref<32x2xf32, #tpu.memory_space<vmem>>, %arg3: memref<2x32xf32, #tpu.memory_space<vmem>>, %arg4: memref<512x256xf32, #tpu.memory_space<vmem>>, %arg5: memref<1x32x256xf32, #tpu.memory_space<vmem>>) attributes {dimension_semantics = [#tpu.dimension_semantics<parallel>], iteration_bounds = array<i64: 2>, scalar_prefetch = 0 : i64, scratch_operands = 0 : i64, tpu.core_type = #tpu.core_type<tc>, window_params = [{transform_indices = @transform_0, window_bounds = array<i64: 1, 32, 256>}, {pipeline_mode = #tpu.pipeline_mode<synchronous>, transform_indices = @transform_1, window_bounds = array<i64: 32, 2>}, {pipeline_mode = #tpu.pipeline_mode<synchronous>, transform_indices = @transform_2, window_bounds = array<i64: 2, 32>}, {pipeline_mode = #tpu.pipeline_mode<synchronous>, transform_indices = @transform_3, window_bounds = array<i64: 512, 256>}, {transform_indices = @transform_4, window_bounds = array<i64: 1, 32, 256>}]} {
    %c0 = arith.constant 0 : index
    %c0_0 = arith.constant 0 : index
    %c0_1 = arith.constant 0 : index
    %0 = vector.load %arg1[%c0, %c0_0, %c0_1] : memref<1x32x256xf32, #tpu.memory_space<vmem>>, vector<1x32x256xf32>
    %cst = arith.constant dense<0.000000e+00> : vector<1x32xf32>
    %1 = vector.multi_reduction <add>, %0, %cst [2] : vector<1x32x256xf32> to vector<1x32xf32>
    %cst_2 = arith.constant 3.906250e-03 : f32
    %2 = vector.broadcast %cst_2 : f32 to vector<1x32xf32>
    %3 = arith.mulf %1, %2 : vector<1x32xf32>
    %cst_3 = arith.constant dense<0xFF800000> : vector<1x32xf32>
    %4 = vector.multi_reduction <maximumf>, %0, %cst_3 [2] : vector<1x32x256xf32> to vector<1x32xf32>
    %5 = tpu.concatenate %3, %4 in 0 : vector<1x32xf32>, vector<1x32xf32> -> vector<2x32xf32>
    %c0_4 = arith.constant 0 : index
    %c0_5 = arith.constant 0 : index
    %6 = vector.load %arg2[%c0_4, %c0_5] : memref<32x2xf32, #tpu.memory_space<vmem>>, vector<32x2xf32>
    %cst_6 = arith.constant dense<0.000000e+00> : vector<2x2xf32>
    %7 = tpu.matmul %5, %6, %cst_6 {dimension_numbers = #tpu.dot_dimension_numbers<[1], [0], [0], [1], [0, 0, 1, 1], [], []>} : vector<2x32xf32>, vector<32x2xf32>, vector<2x2xf32> -> vector<2x2xf32>
    %cst_7 = arith.constant 0.000000e+00 : f32
    %8 = vector.broadcast %cst_7 : f32 to vector<2x2xf32>
    %9 = arith.maximumf %7, %8 : vector<2x2xf32>
    %c0_8 = arith.constant 0 : index
    %c0_9 = arith.constant 0 : index
    %10 = vector.load %arg3[%c0_8, %c0_9] : memref<2x32xf32, #tpu.memory_space<vmem>>, vector<2x32xf32>
    %cst_10 = arith.constant dense<0.000000e+00> : vector<2x32xf32>
    %11 = tpu.matmul %9, %10, %cst_10 {dimension_numbers = #tpu.dot_dimension_numbers<[1], [0], [0], [1], [0, 0, 1, 1], [], []>} : vector<2x2xf32>, vector<2x32xf32>, vector<2x32xf32> -> vector<2x32xf32>
    %12 = vector.extract_strided_slice %11 {offsets = [0, 0], sizes = [1, 32], strides = [1, 1]} : vector<2x32xf32> to vector<1x32xf32>
    %13 = vector.extract_strided_slice %11 {offsets = [1, 0], sizes = [1, 32], strides = [1, 1]} : vector<2x32xf32> to vector<1x32xf32>
    %14 = arith.addf %12, %13 : vector<1x32xf32>
    %15 = arith.negf %14 : vector<1x32xf32>
    %16 = math.exp %15 : vector<1x32xf32>
    %cst_11 = arith.constant 1.000000e+00 : f32
    %17 = vector.broadcast %cst_11 : f32 to vector<1x32xf32>
    %18 = arith.addf %17, %16 : vector<1x32xf32>
    %19 = arith.divf %17, %18 : vector<1x32xf32>
    %20 = vector.shape_cast %19 : vector<1x32xf32> to vector<1x32x1xf32>
    %21 = vector.broadcast %20 : vector<1x32x1xf32> to vector<1x32x256xf32>
    %22 = arith.mulf %0, %21 : vector<1x32x256xf32>
    %cst_12 = arith.constant dense<0.000000e+00> : vector<1x256xf32>
    %23 = vector.multi_reduction <add>, %22, %cst_12 [1] : vector<1x32x256xf32> to vector<1x256xf32>
    %cst_13 = arith.constant 3.200000e+01 : f32
    %24 = vector.broadcast %cst_13 : f32 to vector<1x256xf32>
    %25 = arith.divf %23, %24 : vector<1x256xf32>
    %cst_14 = arith.constant dense<0xFF800000> : vector<1x256xf32>
    %26 = vector.multi_reduction <maximumf>, %22, %cst_14 [1] : vector<1x32x256xf32> to vector<1x256xf32>
    %27 = tpu.concatenate %25, %26 in 1 : vector<1x256xf32>, vector<1x256xf32> -> vector<1x512xf32>
    %c0_15 = arith.constant 0 : index
    %c0_16 = arith.constant 0 : index
    %28 = vector.load %arg4[%c0_15, %c0_16] : memref<512x256xf32, #tpu.memory_space<vmem>>, vector<512x256xf32>
    %cst_17 = arith.constant dense<0.000000e+00> : vector<1x256xf32>
    %29 = tpu.matmul %27, %28, %cst_17 {dimension_numbers = #tpu.dot_dimension_numbers<[1], [0], [0], [1], [0, 0, 1, 1], [], []>} : vector<1x512xf32>, vector<512x256xf32>, vector<1x256xf32> -> vector<1x256xf32>
    %30 = arith.negf %29 : vector<1x256xf32>
    %31 = math.exp %30 : vector<1x256xf32>
    %cst_18 = arith.constant 1.000000e+00 : f32
    %32 = vector.broadcast %cst_18 : f32 to vector<1x256xf32>
    %33 = arith.addf %32, %31 : vector<1x256xf32>
    %34 = arith.divf %32, %33 : vector<1x256xf32>
    %35 = vector.shape_cast %34 : vector<1x256xf32> to vector<1x1x256xf32>
    %36 = vector.broadcast %35 : vector<1x1x256xf32> to vector<1x32x256xf32>
    %37 = arith.mulf %22, %36 : vector<1x32x256xf32>
    %c0_19 = arith.constant 0 : index
    %c0_20 = arith.constant 0 : index
    %c0_21 = arith.constant 0 : index
    %38 = vector.load %arg5[%c0_19, %c0_20, %c0_21] : memref<1x32x256xf32, #tpu.memory_space<vmem>>, vector<1x32x256xf32>
    tpu.vector_store %arg5[%c0_19, %c0_20, %c0_21], %37 {strides = array<i32>} : memref<1x32x256xf32, #tpu.memory_space<vmem>>, vector<1x32x256xf32>,
    return
  }
  func.func @transform_0(%arg0: i32) -> (i32, i32, i32) {
    %c0_i32 = arith.constant 0 : i32
    %c0_i32_0 = arith.constant 0 : i32
    %c0_i32_1 = arith.constant 0 : i32
    return %arg0, %c0_i32, %c0_i32_0 : i32, i32, i32
  }
  func.func @transform_1(%arg0: i32) -> (i32, i32) {
    %c0_i32 = arith.constant 0 : i32
    %c0_i32_0 = arith.constant 0 : i32
    %c0_i32_1 = arith.constant 0 : i32
    return %c0_i32, %c0_i32_0 : i32, i32
  }
  func.func @transform_2(%arg0: i32) -> (i32, i32) {
    %c0_i32 = arith.constant 0 : i32
    %c0_i32_0 = arith.constant 0 : i32
    %c0_i32_1 = arith.constant 0 : i32
    return %c0_i32, %c0_i32_0 : i32, i32
  }
  func.func @transform_3(%arg0: i32) -> (i32, i32) {
    %c0_i32 = arith.constant 0 : i32
    %c0_i32_0 = arith.constant 0 : i32
    %c0_i32_1 = arith.constant 0 : i32
    return %c0_i32, %c0_i32_0 : i32, i32
  }
  func.func @transform_4(%arg0: i32) -> (i32, i32, i32) {
    %c0_i32 = arith.constant 0 : i32
    %c0_i32_0 = arith.constant 0 : i32
    %c0_i32_1 = arith.constant 0 : i32
    return %arg0, %c0_i32, %c0_i32_0 : i32, i32, i32
  }
}

</mosaic_0001>

<bundles_post_ra>
// kernel: tpu_custom_call.1
= control target key start
LH: loop header
LB: loop body
LE: loop exit
PB: predicated region body
PF: predicated region fallthrough
CT: control target
= control target key end

     0   :  { %9 = vsyncpa [#allocation3], 0  ;;  %s1424_s0 = inlined_call_operand.hbm [shape: f32[2,32,256], index: 0, kind: input, shape index: {}]   ;;  %s1425_s1 = inlined_call_operand.vmem [shape: f32[32,2], index: 1, kind: input, shape index: {}]   ;;  %s1426_s2 = inlined_call_operand.vmem [shape: f32[2,32], index: 2, kind: input, shape index: {}]   ;;  %s1427_s3 = inlined_call_operand.hbm [shape: f32[512,256], index: 3, kind: input, shape index: {}]   ;;  %s1428_s4 = inlined_call_operand.hbm [shape: f32[2,32,256], index: 4, kind: output, shape index: {}]  }
   0x1   :  { %11 = vsyncpa [#allocation3 + $0x1], 0 }
   0x2   :  { %12 = vsyncpa [#allocation6], 0 }
   0x3   :  { %13 = vsyncpa [#allocation4], 0 }
   0x4   :  { %15 = vsyncpa [#allocation4 + $0x1], 0  ;;  %s1175_s15 = smov 0   ;;  %s1177_s16 = smov 0  }
   0x5   :  { %s1179_s17 = smov 0   ;;  %s1181_s18 = smov 0  }
   0x6 LB: > { %s1196_s19 = sadd.s32 4294967295, %s1142_s18   ;;  %s907_s20 = sadd.s32 4294967294, %s1142_s18   ;;  %s1142_s18 = sphi %s1181_s18, %s1438_s18   ;;  %s1138_s17 = sphi %s1179_s17, %s1437_s17   ;;  %s1134_s16 = sphi %s1177_s16, %s1436_s16   ;;  %s1130_s15 = sphi %s1175_s15, %s1435_s15  }
   0x7   : > { %p41_p0 = scmp.ne.s32.totalorder %s1134_s16, %s1130_s15  ;;  %p42_p1 = scmp.eq.s32.totalorder %s1196_s19, 0 }
   0x8   : > { %p128_p2 = scmp.eq.s32.totalorder %s1196_s19, 1  ;;  %p134_p3 = scmp.eq.s32.totalorder %s907_s20, 1 }
   0x9   : > { %p1205_p4 = por %p42_p1, %p41_p0  ;;  %p908_p5 = scmp.ge.s32.totalorder %s1142_s18, 1 }
   0xa   : > { %p1210_p6 = por %p134_p3, %p41_p0  ;;  %p141_p7 = scmp.lt.s32.totalorder %s1142_s18, 3 }
   0xb   : > { %s158_s25 = sshll.u32 %s1427_s3, 4  ;;  %s1144_s27 = smov [#allocation5]   ;;  %s159_s25 = int_to_ptr.hbm [resolvable:$true] %s158_s25 }
   0xc   : > { %p1218_p8 = pnand %p908_p5, %p141_p7  ;;  %s160_s28 = sshll.u32 %s1144_s27, 4  ;;  %s161_s28 = int_to_ptr.vmem [resolvable:$true] %s160_s28 }
   0xd   : > { %s1228_s29 = sadd.s32 1, %s1142_s18   ;;  %s1145_s30 = smov 256  }
   0xe   : > { %p939_p9 = pneg %p1218_p8  ;;  %s1146_s5 = smov 16  }
   0xf   : > { %s25_s6 = ssub.s32 %s1142_s18, %s1228_s29  ;;  %s28_s7 = sadd.s32 1, %s1138_s17 }
  0x10   : > { %p940_p10 = pnand %p939_p9, %p42_p1  ;;  %p26_p12 = scmp.eq.s32.totalorder %s25_s6, 0 }
  0x11   : > { %p35_p13 = scmp.ne.s32.totalorder %s1138_s17, %s1134_s16  ;;  %p36_p0 = scmp.eq.s32.totalorder %s1142_s18, 0 }
  0x12   : > { %942 = dma.hbm_to_vmem [thread:$0]  (!%p940_p10), %s159_s25, 16384, %s161_s28, [#allocation6], %s1145_s30, %s1145_s30, %s1146_s5  }
  0x13   : > { %s1240_s8 = scalar_select %p26_p12, %s1138_s17, %s28_s7  }
  0x14   : > { %p1244_p3 = por %p128_p2, %p35_p13  ;;  %p952_p5 = scmp.lt.s32.totalorder %s1142_s18, 2 }
  0x15   : > { %s174_s10 = sand.u32 1, %s1138_s17   ;;  %s929_s11 = sshll.u32 %s1142_s18, 6 }
  0x16   : > { %p37_p7 = por %p36_p0, %p35_p13  ;;  %s911_s12 = sshll.u32 %s174_s10, 6 }
  0x17   : > { %s183_s20 = scalar_lea.hbm %s1424_s0, %s929_s11  ;;  %s178_s24 = scalar_lea.vmem [#allocation2], %s911_s12 }
  0x18   : > { %s184_s23 = sshll.u32 %s183_s20, 4  ;;  %s186_s25 = sshll.u32 %s178_s24, 4  ;;  %s185_s23 = int_to_ptr.hbm [resolvable:$true] %s184_s23  ;;  %s187_s25 = int_to_ptr.vmem [resolvable:$true] %s186_s25 }
  0x19   : > { %p1254_p9 = pnand %p952_p5, %p37_p7  ;;  %s175_s28 = scalar_lea.sflag [#allocation3], %s174_s10 }
  0x1a   : > { %s1042_s6 = sshra.s32 %s185_s23, 4  ;;  %s1049_s12 = scalar_lea.hbm %s1424_s0, 128  ;;  %s1043_s6 = int_to_ptr.hbm [resolvable:$true] %s1042_s6 }
  0x1b   : > { %s1044_s7 = scalar_lea.hbm %s1043_s6, 64  ;;  %p1046_p10 = pneg %p1254_p9 }
  0x1c   : > { %p1045_p2 = scmp.ne.s32.totalorder %s1043_s6, %s1044_s7  ;;  %p1050_p0 = scmp.lt.s32.totalorder %s1043_s6, %s1424_s0 }
  0x1d   : > { %p1051_p5 = scmp.lt.s32.totalorder %s1049_s12, %s1044_s7 }
  0x1e   : > { %p1047_p12 = pnand %p1046_p10, %p1045_p2 }
  0x1f   : > { %p1052_p7 = por %p1051_p5, %p1050_p0 }
  0x20   : > { %p1048_p13 = pneg %p1047_p12 }
  0x22   : > { %p1053_p11 = pnand %p1052_p7, %p1048_p13 }
  0x24   : > { %1056 = shalt.err (!%p1053_p11)
}
  0x25   : > { %946 = dma.hbm_to_vmem [thread:$0]  (!%p1254_p9), %s185_s23, 1024, %s187_s25, %s175_s28, %s1145_s30, %s1145_s30, %s1146_s5  }
  0x26   : > { %198 = sbr.rel (%p1218_p8) target bundleno = 797 (0x31d), region = 36  ;;  %s1274_s10 = sand.u32 (!%p1218_p8), 1, %s1134_s16  }
  0x27   : > { %s915_s24 = sshll.u32 (!%p1218_p8), %s1274_s10, 6  ;;  %s201_s6 = scalar_lea.sflag (!%p1218_p8), [#allocation3], %s1274_s10 }
  0x28   : > { %s204_s7 = scalar_lea.vmem (!%p1218_p8), [#allocation2], %s915_s24 }
  0x2b   : > { %1117 = dma.done.wait (%p1205_p4), %s201_s6, 1024  }
  0x2c   : > { %1119 = vsyncadd (%p1205_p4), %s201_s6, 4294966272 }
  0x2d   : > { %1121 = dma.done.wait (%p42_p1), [#allocation6], 16384  }
  0x2e   : > { %1123 = vsyncadd (%p42_p1), [#allocation6], 4294950912  ;;  %v1288_v0 = vld [vmem:[%s204_s7] sm:$0xff]  ;;  %v1290_v1 = vld [vmem:[%s204_s7 + $0x8] sm:$0xff]  ;;  %v275_v23 = vlaneseq  ;;  %vm280_vm0 = vcmask 130112   ;;  %vm284_vm1 = vcmask 195712  }
  0x2f   : > { %v1292_v2 = vld [vmem:[%s204_s7 + $0x20] sm:$0xff]  ;;  %v259_v3 = vmax.f32 %v1288_v0, %v1290_v1  ;;  %v243_v4 = vadd.f32 %v1290_v1, %v1288_v0  ;;  %v1298_v5 = vld [vmem:[%s204_s7 + $0x28] sm:$0xff]  ;;  %v1302_v7 = vld [vmem:[%s204_s7 + $0x10] sm:$0xff]  ;;  %vm288_vm2 = vcmask 261312   ;;  %vm303_vm3 = vcmask 1040384   ;;  %s234_s12 = scalar_lea.vmem [#allocation7], %s915_s24 }
  0x30   : > { %v249_v6 = vadd.f32 %v1298_v5, %v1292_v2  ;;  %v1304_v8 = vld [vmem:[%s204_s7 + $0x18] sm:$0xff]  ;;  %v1306_v9 = vld [vmem:[%s204_s7 + $0x30] sm:$0xff]  ;;  %v265_v14 = vmax.f32 %v1292_v2, %v1298_v5  ;;  %v306_v18 = vld [vmem:[%s1425_s1 + $0x8] sm:$0xff]  ;;  %v276_v24 = vand.u32 127, %v275_v23  ;;  %vm309_vm4 = vcmask 261120   ;;  %s930_s14 = sshll.u32 %s1196_s19, 6 }
  0x31   : > { %260 = vmax.xlane.f32.xlu2 %v259_v3  ;;  %244 = vadd.xlane.f32.xlu0 %v243_v4  ;;  %v1308_v10 = vld [vmem:[%s204_s7 + $0x38] sm:$0xff]  ;;  %v262_v11 = vmax.f32 %v1302_v7, %v1304_v8  ;;  %v246_v12 = vadd.f32 %v1304_v8, %v1302_v7  ;;  %v307_v17 = vld [vmem:[%s1425_s1 + $0x10] sm:$0xff]  ;;  %v305_v19 = vld [vmem:[%s1425_s1] sm:$0xff]  ;;  %vm339_vm5 = vcmask 1041408   ;;  %vm335_vm6 = vcmask 15360   ;;  %s820_s7 = scalar_lea.hbm %s1428_s4, %s930_s14  ;;  %s821_s21 = sshll.u32 %s234_s12, 4  ;;  %s822_s21 = int_to_ptr.vmem [resolvable:$true] %s821_s21 }
  0x32   : > { %250 = vadd.xlane.f32.xlu1 %v249_v6  ;;  %v252_v13 = vadd.f32 %v1308_v10, %v1306_v9  ;;  %v268_v15 = vmax.f32 %v1306_v9, %v1308_v10  ;;  %v308_v16 = vld [vmem:[%s1425_s1 + $0x18] sm:$0xff]  ;;  %v278_v27 = vadd.s32 4294967288, %v276_v24  ;;  %v282_v30 = vadd.s32 4294967280, %v276_v24  ;;  %v334_v52 = vld [vmem:[%s1426_s2] sm:$0x3]  ;;  %v558_v3 = vld [vmem:[#allocation5 + $0x2f0] sm:$0xff] }
  0x33   : > { %325 = vmatpush.msra.mxu0 %v308_v16  ;;  %v286_v35 = vadd.s32 4294967272, %v276_v24  ;;  %919 = vmatpush.msk.msra.mxu1 %vm339_vm5, %v334_v52  ;;  %v1335_v55 = vshrl.u32 %v275_v23, 7  ;;  %v590_v4 = vld [vmem:[#allocation5 + $0x3f0] sm:$0xff]  ;;  %v556_v6 = vld [vmem:[#allocation5 + $0x2e0] sm:$0xff]  ;;  %s823_s24 = sshll.u32 %s820_s7, 4  ;;  %s809_s19 = scalar_lea.sflag [#allocation4], %s1274_s10  ;;  %s824_s24 = int_to_ptr.hbm [resolvable:$true] %s823_s24 }
  0x34   : > { %v586_v16 = vld [vmem:[#allocation5 + $0x3d0] sm:$0xff]  ;;  %v480_v52 = vld [vmem:[#allocation5 + $0x80] sm:$0xff]  ;;  %s1086_s26 = sshra.s32 %s824_s24, 4  ;;  %s1092_s25 = scalar_lea.hbm %s1428_s4, 128  ;;  %s1087_s26 = int_to_ptr.hbm [resolvable:$true] %s1086_s26 }
  0x35   : > { %326 = vmatpush.msra.mxu0 %v307_v17  ;;  %993 = vset.pattern.permute.xlu2 %v1335_v55  ;;  %v401_v56 = vadd.s32 16, %v1335_v55  ;;  %v395_v57 = vadd.s32 8, %v1335_v55  ;;  %v492_v17 = vld [vmem:[#allocation5 + $0xe0] sm:$0xff]  ;;  %v522_v23 = vld [vmem:[#allocation5 + $0x1d0] sm:$0xff]  ;;  %s1088_s30 = scalar_lea.hbm %s1087_s26, 64  ;;  %p1093_p11 = scmp.lt.s32.totalorder %s1087_s26, %s1428_s4 }
  0x36   : > { %632 = vmatpush.msrb.mxu1 %v558_v3  ;;  %v474_v3 = vld [vmem:[#allocation5 + $0x50] sm:$0xff]  ;;  %p1089_p1 = scmp.ne.s32.totalorder %s1087_s26, %s1088_s30  ;;  %p1094_p9 = scmp.lt.s32.totalorder %s1092_s25, %s1088_s30 }
  0x37   : > { %327 = vmatpush.msra.mxu0 %v306_v18  ;;  %995 = vset.pattern.permute.xlu1 %v401_v56  ;;  %v478_v56 = vld [vmem:[#allocation5 + $0x70] sm:$0xff] }
  0x38   : > { %994 = vset.pattern.permute.xlu0 %v395_v57  ;;  %633 = vmatpush.msrb.mxu1 %v556_v6  ;;  %v510_v57 = vld [vmem:[#allocation5 + $0x170] sm:$0xff]  ;;  %p1090_p4 = pnand %p1089_p1, %p1244_p3  ;;  %p1095_p2 = por %p1094_p9, %p1093_p11 }
  0x39   : > { %263 = vmax.xlane.f32.xlu2 %v262_v11  ;;  %247 = vadd.xlane.f32.xlu0 %v246_v12  ;;  %v588_v11 = vld [vmem:[#allocation5 + $0x3e0] sm:$0xff]  ;;  %v494_v12 = vld [vmem:[#allocation5 + $0xf0] sm:$0xff] }
  0x3a   : > { %253 = vadd.xlane.f32.xlu1 %v252_v13  ;;  %328 = vmatpush.msra.mxu0 %v305_v19  ;;  %v526_v13 = vld [vmem:[#allocation5 + $0x1f0] sm:$0xff]  ;;  %v524_v19 = vld [vmem:[#allocation5 + $0x1e0] sm:$0xff]  ;;  %p1091_p8 = pneg %p1090_p4 }
  0x3b   : > { %592 = vmatpush.msra.mxu2 %v494_v12  ;;  %612 = vmatpush.msra.mxu3 %v526_v13  ;;  %v534_v6 = vld [vmem:[#allocation5 + $0x230] sm:$0xff]  ;;  %v472_v12 = vld [vmem:[#allocation5 + $0x40] sm:$0xff] }
  0x3c   : > { %652 = vmatpush.msrb.mxu0 %v590_v4  ;;  %v506_v4 = vld [vmem:[#allocation5 + $0x150] sm:$0xff]  ;;  %v504_v13 = vld [vmem:[#allocation5 + $0x140] sm:$0xff]  ;;  %p1096_p10 = pnand %p1095_p2, %p1091_p8 }
  0x3d   : > { %593 = vmatpush.msra.mxu2 %v492_v17  ;;  %613 = vmatpush.msra.mxu3 %v524_v19  ;;  %v502_v17 = vld [vmem:[#allocation5 + $0x130] sm:$0xff] }
  0x3e   : > { %653 = vmatpush.msrb.mxu0 %v588_v11  ;;  %v566_v11 = vld [vmem:[#allocation5 + $0x330] sm:$0xff] }
  0x3f   : > { %614 = vmatpush.msra.mxu3 %v522_v23  ;;  %v562_v19 = vld [vmem:[#allocation5 + $0x310] sm:$0xff]  ;;  %v560_v23 = vld [vmem:[#allocation5 + $0x300] sm:$0xff] }
  0x40   : > { %654 = vmatpush.msrb.mxu0 %v586_v16  ;;  %v470_v16 = vld [vmem:[#allocation5 + $0x30] sm:$0xff] }
  0x41   : > { %266 = vmax.xlane.f32.xlu0 %v265_v14 }
  0x42   : > { %269 = vmax.xlane.f32.xlu1 %v268_v15  ;;  %v554_v15 = vld [vmem:[#allocation5 + $0x2d0] sm:$0xff] }
  0x43   : > { %634 = vmatpush.msrb.mxu1 %v554_v15  ;;  %v564_v15 = vld [vmem:[#allocation5 + $0x320] sm:$0xff] }
  0xa4   : > { %v245_v20 = vpop.xlane.xlu0 %244  ;;  %v261_v21 = vpop.xlane.xlu2 %260 }
  0xa5   : > { %v251_v22 = vpop.xlane.xlu1 %250  ;;  %v255_v25 = vmul.f32 0.00390625, %v245_v20  ;;  %v295_v37 = vperm.slane %v261_v21, %v276_v24  ;;  %v552_v20 = vld [vmem:[#allocation5 + $0x2c0] sm:$0xff] }
  0xa6   : > { %v257_v31 = vmul.f32 0.00390625, %v251_v22  ;;  %v584_v21 = vld [vmem:[#allocation5 + $0x3c0] sm:$0xff]  ;;  %v490_v22 = vld [vmem:[#allocation5 + $0xd0] sm:$0xff]  ;;  %635 = vmatpush.msrb.mxu1 %v552_v20 }
  0xa7   : > { %v277_v34 = vperm.slane %v255_v25, %v276_v24  ;;  %v488_v25 = vld [vmem:[#allocation5 + $0xc0] sm:$0xff]  ;;  %594 = vmatpush.msra.mxu2 %v490_v22  ;;  %655 = vmatpush.msrb.mxu0 %v584_v21 }
  0xa8   : > { %v283_v40 = vperm.slane %v257_v31, %v282_v30  ;;  %v468_v20 = vld [vmem:[#allocation5 + $0x20] sm:$0xff] }
  0xa9   : > { %595 = vmatpush.msra.mxu2 %v488_v25  ;;  %v500_v21 = vld [vmem:[#allocation5 + $0x120] sm:$0xff]  ;;  %v591_v25 = vld [vmem:[#allocation5 + $0x3f8] sm:$0xff] }
  0xaa   : > { %v528_v22 = vld [vmem:[#allocation5 + $0x200] sm:$0xff] }
  0xac   : > { %v248_v26 = vpop.xlane.xlu0 %247  ;;  %v264_v32 = vpop.xlane.xlu2 %263 }
  0xad   : > { %v256_v28 = vmul.f32 0.00390625, %v248_v26  ;;  %v254_v29 = vpop.xlane.xlu1 %253  ;;  %v296_v38 = vperm.slane %v264_v32, %v278_v27  ;;  %v548_v32 = vld [vmem:[#allocation5 + $0x2a0] sm:$0xff] }
  0xae   : > { %v258_v36 = vmul.f32 0.00390625, %v254_v29  ;;  %v520_v29 = vld [vmem:[#allocation5 + $0x1c0] sm:$0xff] }
  0xaf   : > { %v279_v33 = vperm.slane %v256_v28, %v278_v27  ;;  %v297_v46 = vsel %vm280_vm0, %v296_v38, %v295_v37  ;;  %v550_v27 = vld [vmem:[#allocation5 + $0x2b0] sm:$0xff]  ;;  %615 = vmatpush.msra.mxu3 %v520_v29  ;;  %v589_v29 = vld [vmem:[#allocation5 + $0x3e8] sm:$0xff] }
  0xb0   : > { %v287_v41 = vperm.slane %v258_v36, %v286_v35  ;;  %v582_v28 = vld [vmem:[#allocation5 + $0x3b0] sm:$0xff]  ;;  %636 = vmatpush.msrb.mxu1 %v550_v27 }
  0xb1   : > { %v281_v39 = vsel %vm280_vm0, %v279_v33, %v277_v34  ;;  %v580_v33 = vld [vmem:[#allocation5 + $0x3a0] sm:$0xff]  ;;  %656 = vmatpush.msrb.mxu0 %v582_v28  ;;  %v498_v27 = vld [vmem:[#allocation5 + $0x110] sm:$0xff]  ;;  %v557_v28 = vld [vmem:[#allocation5 + $0x2e8] sm:$0xff] }
  0xb2   : > { %v285_v45 = vsel %vm284_vm1, %v283_v40, %v281_v39  ;;  %637 = vmatpush.msrb.mxu1 %v548_v32  ;;  %v407_v39 = vadd.s32 24, %v1335_v55  ;;  %v486_v40 = vld [vmem:[#allocation5 + $0xb0] sm:$0xff]  ;;  %v572_v55 = vld [vmem:[#allocation5 + $0x360] sm:$0xff]  ;;  %v495_v32 = vld [vmem:[#allocation5 + $0xf8] sm:$0xff] }
  0xb3   : > { %v289_v49 = vsel %vm288_vm2, %v287_v41, %v285_v45  ;;  %657 = vmatpush.msrb.mxu0 %v580_v33  ;;  %v518_v41 = vld [vmem:[#allocation5 + $0x1b0] sm:$0xff]  ;;  %596 = vmatpush.msra.mxu2 %v486_v40  ;;  %v516_v45 = vld [vmem:[#allocation5 + $0x1a0] sm:$0xff]  ;;  %v527_v33 = vld [vmem:[#allocation5 + $0x1f8] sm:$0xff] }
  0xb4   : > { %v267_v42 = vpop.xlane.xlu0 %266  ;;  %616 = vmatpush.msra.mxu3 %v518_v41  ;;  %v491_v40 = vld [vmem:[#allocation5 + $0xd8] sm:$0xff] }
  0xb5   : > { %v298_v43 = vperm.slane %v267_v42, %v282_v30  ;;  %v270_v44 = vpop.xlane.xlu1 %269  ;;  %v546_v42 = vld [vmem:[#allocation5 + $0x290] sm:$0xff]  ;;  %v523_v41 = vld [vmem:[#allocation5 + $0x1d8] sm:$0xff] }
  0xb6   : > { %v300_v47 = vperm.slane %v270_v44, %v286_v35  ;;  %v484_v44 = vld [vmem:[#allocation5 + $0xa0] sm:$0xff]  ;;  %638 = vmatpush.msrb.mxu1 %v546_v42  ;;  %617 = vmatpush.msra.mxu3 %v516_v45  ;;  %v551_v42 = vld [vmem:[#allocation5 + $0x2b8] sm:$0xff]  ;;  %v521_v45 = vld [vmem:[#allocation5 + $0x1c8] sm:$0xff] }
  0xb7   : > { %v299_v48 = vsel %vm284_vm1, %v298_v43, %v297_v46  ;;  %v578_v43 = vld [vmem:[#allocation5 + $0x390] sm:$0xff]  ;;  %v544_v46 = vld [vmem:[#allocation5 + $0x280] sm:$0xff]  ;;  %597 = vmatpush.msra.mxu2 %v484_v44  ;;  %v489_v44 = vld [vmem:[#allocation5 + $0xc8] sm:$0xff] }
  0xb8   : > { %v301_v50 = vsel %vm288_vm2, %v300_v47, %v299_v48  ;;  %658 = vmatpush.msrb.mxu0 %v578_v43  ;;  %v576_v47 = vld [vmem:[#allocation5 + $0x380] sm:$0xff]  ;;  %v482_v48 = vld [vmem:[#allocation5 + $0x90] sm:$0xff]  ;;  %639 = vmatpush.msrb.mxu1 %v544_v46  ;;  %v583_v43 = vld [vmem:[#allocation5 + $0x3b8] sm:$0xff] }
  0xb9   : > { %v304_v51 = vsel %vm303_vm3, %v289_v49, %v301_v50  ;;  %v514_v49 = vld [vmem:[#allocation5 + $0x190] sm:$0xff]  ;;  %598 = vmatpush.msra.mxu2 %v482_v48  ;;  %v549_v46 = vld [vmem:[#allocation5 + $0x2a8] sm:$0xff]  ;;  %v487_v48 = vld [vmem:[#allocation5 + $0xb8] sm:$0xff] }
  0xba   : > { %918 = vmatmul.msk.f32.vlgmr.msra.gmra.mxu0 %vm309_vm4, %v304_v51  ;;  %v542_v50 = vld [vmem:[#allocation5 + $0x270] sm:$0xff]  ;;  %618 = vmatpush.msra.mxu3 %v514_v49  ;;  %v519_v49 = vld [vmem:[#allocation5 + $0x1b8] sm:$0xff] }
  0xbb   : > { %v574_v51 = vld [vmem:[#allocation5 + $0x370] sm:$0xff]  ;;  %659 = vmatpush.msrb.mxu0 %v576_v47  ;;  %640 = vmatpush.msrb.mxu1 %v542_v50  ;;  %v581_v47 = vld [vmem:[#allocation5 + $0x3a8] sm:$0xff]  ;;  %v547_v50 = vld [vmem:[#allocation5 + $0x298] sm:$0xff] }
  0xbc   : > { %599 = vmatpush.msra.mxu2 %v480_v52  ;;  %v485_v52 = vld [vmem:[#allocation5 + $0xa8] sm:$0xff] }
  0xbd   : > { %660 = vmatpush.msrb.mxu0 %v574_v51  ;;  %v579_v51 = vld [vmem:[#allocation5 + $0x398] sm:$0xff] }
  0xbe   : > { %600 = vmatpush.msra.mxu2 %v478_v56  ;;  %v483_v56 = vld [vmem:[#allocation5 + $0x98] sm:$0xff] }
  0xbf   : > { %661 = vmatpush.msrb.mxu0 %v572_v55  ;;  %v577_v55 = vld [vmem:[#allocation5 + $0x388] sm:$0xff] }
 0x137   : > { %v330_v53 = vpop.f32.mrf.mxu0 }
 0x138   : > { %v333_v54 = vmax.f32 %v330_v53, 0.0  ;;  %v512_v53 = vld [vmem:[#allocation5 + $0x180] sm:$0xff] }
 0x139   : > { %619 = vmatpush.msra.mxu3 %v512_v53  ;;  %v517_v53 = vld [vmem:[#allocation5 + $0x1a8] sm:$0xff] }
 0x13a   : > { %920 = vmatmul.msk.f32.vlgmr.msra.gmra.mxu1 %vm335_vm6, %v333_v54  ;;  %v540_v54 = vld [vmem:[#allocation5 + $0x260] sm:$0xff] }
 0x13b   : > { %641 = vmatpush.msrb.mxu1 %v540_v54  ;;  %620 = vmatpush.msra.mxu3 %v510_v57  ;;  %v545_v54 = vld [vmem:[#allocation5 + $0x288] sm:$0xff]  ;;  %v515_v57 = vld [vmem:[#allocation5 + $0x198] sm:$0xff] }
 0x1b7   : > { %v360_v58 = vpop.f32.mrf.mxu1 }
 0x1b8   : > { %v364_v59 = vrot.slane %v360_v58, 1 }
 0x1ba   : > { %v366_v60 = vadd.f32 %v364_v59, %v360_v58  ;;  %v538_v58 = vld [vmem:[#allocation5 + $0x250] sm:$0xff] }
 0x1bb   : > { %v570_v59 = vld [vmem:[#allocation5 + $0x350] sm:$0xff]  ;;  %642 = vmatpush.msrb.mxu1 %v538_v58  ;;  %v543_v58 = vld [vmem:[#allocation5 + $0x278] sm:$0xff] }
 0x1bc   : > { %v921_v61 = vmul.f32 -1.442695, %v366_v60  ;;  %v476_v60 = vld [vmem:[#allocation5 + $0x60] sm:$0xff]  ;;  %662 = vmatpush.msrb.mxu0 %v570_v59  ;;  %v575_v59 = vld [vmem:[#allocation5 + $0x378] sm:$0xff] }
 0x1bd   : > { %601 = vmatpush.msra.mxu2 %v476_v60  ;;  %v481_v60 = vld [vmem:[#allocation5 + $0x88] sm:$0xff] }
 0x1be   : > { %998 = vpow2.f32 %v921_v61  ;;  %v508_v61 = vld [vmem:[#allocation5 + $0x160] sm:$0xff] }
 0x1bf   : > { %621 = vmatpush.msra.mxu3 %v508_v61  ;;  %602 = vmatpush.msra.mxu2 %v474_v3  ;;  %v513_v61 = vld [vmem:[#allocation5 + $0x188] sm:$0xff]  ;;  %v479_v3 = vld [vmem:[#allocation5 + $0x78] sm:$0xff] }
 0x1c1   : > { %622 = vmatpush.msra.mxu3 %v506_v4  ;;  %603 = vmatpush.msra.mxu2 %v472_v12  ;;  %v511_v4 = vld [vmem:[#allocation5 + $0x178] sm:$0xff]  ;;  %v477_v12 = vld [vmem:[#allocation5 + $0x68] sm:$0xff] }
 0x1c3   : > { %623 = vmatpush.msra.mxu3 %v504_v13  ;;  %604 = vmatpush.msra.mxu2 %v470_v16  ;;  %v509_v13 = vld [vmem:[#allocation5 + $0x168] sm:$0xff]  ;;  %v475_v16 = vld [vmem:[#allocation5 + $0x58] sm:$0xff] }
 0x1c4   : > { %v999_v62 = vpop.eup %998 }
 0x1c5   : > { %v370_v63 = vadd.f32 1.0, %v999_v62  ;;  %v536_v62 = vld [vmem:[#allocation5 + $0x240] sm:$0xff]  ;;  %624 = vmatpush.msra.mxu3 %v502_v17  ;;  %605 = vmatpush.msra.mxu2 %v468_v20  ;;  %v507_v17 = vld [vmem:[#allocation5 + $0x158] sm:$0xff]  ;;  %v473_v20 = vld [vmem:[#allocation5 + $0x48] sm:$0xff] }
 0x1c6   : > { %643 = vmatpush.msrb.mxu1 %v536_v62  ;;  %v541_v62 = vld [vmem:[#allocation5 + $0x268] sm:$0xff] }
 0x1c7   : > { %1000 = vrcp.f32 %v370_v63  ;;  %v382_v26 = vand.u32 2147483648, %v370_v63  ;;  %v380_v31 = vand.u32 2147483647, %v370_v63  ;;  %vm376_vm8 = vweird.f32 %v370_v63  ;;  %625 = vmatpush.msra.mxu3 %v500_v21  ;;  %v505_v21 = vld [vmem:[#allocation5 + $0x148] sm:$0xff] }
 0x1c8   : > { %644 = vmatpush.msrb.mxu1 %v534_v6  ;;  %v539_v6 = vld [vmem:[#allocation5 + $0x258] sm:$0xff] }
 0x1c9   : > { %v383_v35 = vor.u32 1.1754944e-38, %v382_v26  ;;  %vm381_vm10 = vcmp.eq.f32.partialorder %v380_v31, 8.507059e+37  ;;  %v466_v26 = vld [vmem:[#allocation5 + $0x10] sm:$0xff]  ;;  %v496_v31 = vld [vmem:[#allocation5 + $0x100] sm:$0xff]  ;;  %626 = vmatpush.msra.mxu3 %v498_v27  ;;  %v531_v27 = vld [vmem:[#allocation5 + $0x218] sm:$0xff] }
 0x1ca   : > { %606 = vmatpush.msra.mxu2 %v466_v26  ;;  %v503_v26 = vld [vmem:[#allocation5 + $0x138] sm:$0xff] }
 0x1cb   : > { %627 = vmatpush.msra.mxu3 %v496_v31  ;;  %v501_v31 = vld [vmem:[#allocation5 + $0x128] sm:$0xff] }
 0x1cd   : > { %v1001_v14 = vpop.eup %1000  ;;  %692 = vmatpush.msrb.mxu3 %v527_v33  ;;  %v561_v33 = vld [vmem:[#allocation5 + $0x308] sm:$0xff] }
 0x1ce   : > { %v372_v18 = vmul.f32 %v1001_v14, %v370_v63  ;;  %vm377_vm7 = vweird.f32 %v1001_v14  ;;  %v568_v63 = vld [vmem:[#allocation5 + $0x340] sm:$0xff] }
 0x1cf   : > { %vm378_vm9 = vmor %vm376_vm8, %vm377_vm7  ;;  %663 = vmatpush.msrb.mxu0 %v568_v63  ;;  %v573_v63 = vld [vmem:[#allocation5 + $0x368] sm:$0xff] }
 0x1d0   : > { %v373_v24 = vsub.f32 1.0, %v372_v18  ;;  %v530_v18 = vld [vmem:[#allocation5 + $0x210] sm:$0xff] }
 0x1d1   : > { %664 = vmatpush.msrb.mxu0 %v566_v11  ;;  %v571_v11 = vld [vmem:[#allocation5 + $0x358] sm:$0xff] }
 0x1d2   : > { %v374_v30 = vmul.f32 %v1001_v14, %v373_v24  ;;  %v559_v24 = vld [vmem:[#allocation5 + $0x2f8] sm:$0xff] }
 0x1d3   : > { %665 = vmatpush.msrb.mxu0 %v564_v15  ;;  %v569_v15 = vld [vmem:[#allocation5 + $0x348] sm:$0xff] }
 0x1d4   : > { %v375_v34 = vadd.f32 %v1001_v14, %v374_v30  ;;  %v464_v30 = vld [vmem:[#allocation5] sm:$0xff] }
 0x1d5   : > { %666 = vmatpush.msrb.mxu0 %v562_v19  ;;  %607 = vmatpush.msra.mxu2 %v464_v30  ;;  %v567_v19 = vld [vmem:[#allocation5 + $0x338] sm:$0xff]  ;;  %v469_v30 = vld [vmem:[#allocation5 + $0x28] sm:$0xff] }
 0x1d6   : > { %v379_v36 = vsel %vm378_vm9, %v1001_v14, %v375_v34  ;;  %v532_v14 = vld [vmem:[#allocation5 + $0x220] sm:$0xff]  ;;  %v555_v34 = vld [vmem:[#allocation5 + $0x2d8] sm:$0xff] }
 0x1d7   : > { %v384_v37 = vsel %vm381_vm10, %v383_v35, %v379_v36  ;;  %645 = vmatpush.msrb.mxu1 %v532_v14  ;;  %667 = vmatpush.msrb.mxu0 %v560_v23  ;;  %v587_v35 = vld [vmem:[#allocation5 + $0x3d8] sm:$0xff]  ;;  %v493_v36 = vld [vmem:[#allocation5 + $0xe8] sm:$0xff] }
 0x1d8   : > { %v386_v38 = vperm.slane %v384_v37, 0  ;;  %672 = vmatpush.msrb.mxu2 %v495_v32  ;;  %v525_v37 = vld [vmem:[#allocation5 + $0x1e8] sm:$0xff] }
 0x1d9   : > { %646 = vmatpush.msrb.mxu1 %v530_v18  ;;  %732 = vmatpush.msra.mxu0 %v591_v25  ;;  %v537_v14 = vld [vmem:[#allocation5 + $0x248] sm:$0xff]  ;;  %v535_v18 = vld [vmem:[#allocation5 + $0x238] sm:$0xff] }
 0x1da   : > { %403 = vperm.xlu1 %995, %v386_v38   ;;  %397 = vperm.xlu0 %994, %v386_v38   ;;  %v565_v23 = vld [vmem:[#allocation5 + $0x328] sm:$0xff]  ;;  %v471_v25 = vld [vmem:[#allocation5 + $0x38] sm:$0xff] }
 0x1db   : > { %391 = vperm.xlu2 %993, %v386_v38   ;;  %647 = vmatpush.msrb.mxu1 %v528_v22  ;;  %v533_v22 = vld [vmem:[#allocation5 + $0x228] sm:$0xff] }
 0x1dc   : > { %733 = vmatpush.msra.mxu0 %v589_v29  ;;  %673 = vmatpush.msrb.mxu2 %v493_v36  ;;  %v1147_v29 = vmov 32.0   ;;  %v529_v32 = vld [vmem:[#allocation5 + $0x208] sm:$0xff] }
 0x1dd   : > { %712 = vmatpush.msra.mxu1 %v559_v24  ;;  %693 = vmatpush.msrb.mxu3 %v525_v37  ;;  %1002 = vrcp.f32 %v1147_v29  ;;  %v465_v36 = vld [vmem:[#allocation5 + $0x8] sm:$0xff] }
 0x1de   : > { %734 = vmatpush.msra.mxu0 %v587_v35  ;;  %674 = vmatpush.msrb.mxu2 %v491_v40  ;;  %v499_v35 = vld [vmem:[#allocation5 + $0x118] sm:$0xff]  ;;  %v497_v37 = vld [vmem:[#allocation5 + $0x108] sm:$0xff] }
 0x1df   : > { %713 = vmatpush.msra.mxu1 %v557_v28  ;;  %694 = vmatpush.msrb.mxu3 %v523_v41  ;;  %v563_v28 = vld [vmem:[#allocation5 + $0x318] sm:$0xff] }
 0x1e0   : > { %675 = vmatpush.msrb.mxu2 %v489_v44 }
 0x1e1   : > { %714 = vmatpush.msra.mxu1 %v555_v34  ;;  %695 = vmatpush.msrb.mxu3 %v521_v45  ;;  %v467_v34 = vld [vmem:[#allocation5 + $0x18] sm:$0xff] }
 0x1e2   : > { %997 = vset.pattern.permute.xlu0 %v407_v39  ;;  %676 = vmatpush.msrb.mxu2 %v487_v48 }
 0x1e3   : > { %996 = vset.pattern.permute.xlu2 %v407_v39  ;;  %v585_v39 = vld [vmem:[#allocation5 + $0x3c8] sm:$0xff]  ;;  %696 = vmatpush.msrb.mxu3 %v519_v49 }
 0x1e4   : > { %735 = vmatpush.msra.mxu0 %v585_v39  ;;  %677 = vmatpush.msrb.mxu2 %v485_v52 }
 0x1e5   : > { %697 = vmatpush.msrb.mxu3 %v517_v53 }
 0x1e6   : > { %736 = vmatpush.msra.mxu0 %v583_v43  ;;  %678 = vmatpush.msrb.mxu2 %v483_v56 }
 0x1e7   : > { %698 = vmatpush.msrb.mxu3 %v515_v57 }
 0x1e8   : > { %737 = vmatpush.msra.mxu0 %v581_v47  ;;  %679 = vmatpush.msrb.mxu2 %v481_v60 }
 0x1e9   : > { %699 = vmatpush.msrb.mxu3 %v513_v61 }
 0x1ea   : > { %738 = vmatpush.msra.mxu0 %v579_v51  ;;  %680 = vmatpush.msrb.mxu2 %v479_v3 }
 0x1eb   : > { %409 = vperm.xlu2 %996, %v386_v38   ;;  %v553_v38 = vld [vmem:[#allocation5 + $0x2c8] sm:$0xff]  ;;  %700 = vmatpush.msrb.mxu3 %v511_v4 }
 0x1ec   : > { %715 = vmatpush.msra.mxu1 %v553_v38  ;;  %739 = vmatpush.msra.mxu0 %v577_v55  ;;  %v1003_v38 = vpop.eup %1002 }
 0x1ed   : > { %681 = vmatpush.msrb.mxu2 %v477_v12  ;;  %701 = vmatpush.msrb.mxu3 %v509_v13  ;;  %v438_v48 = vmul.f32 32.0, %v1003_v38  ;;  %vm442_vm11 = vweird.f32 %v1003_v38 }
 0x1ee   : > { %716 = vmatpush.msra.mxu1 %v551_v42  ;;  %740 = vmatpush.msra.mxu0 %v575_v59 }
 0x1ef   : > { %682 = vmatpush.msrb.mxu2 %v475_v16  ;;  %702 = vmatpush.msrb.mxu3 %v507_v17  ;;  %v439_v53 = vsub.f32 1.0, %v438_v48 }
 0x1f0   : > { %717 = vmatpush.msra.mxu1 %v549_v46  ;;  %741 = vmatpush.msra.mxu0 %v573_v63 }
 0x1f1   : > { %683 = vmatpush.msrb.mxu2 %v473_v20  ;;  %703 = vmatpush.msrb.mxu3 %v505_v21 }
 0x1f2   : > { %718 = vmatpush.msra.mxu1 %v547_v50  ;;  %742 = vmatpush.msra.mxu0 %v571_v11 }
 0x1f3   : > { %684 = vmatpush.msrb.mxu2 %v471_v25  ;;  %704 = vmatpush.msrb.mxu3 %v503_v26 }
 0x1f4   : > { %719 = vmatpush.msra.mxu1 %v545_v54  ;;  %743 = vmatpush.msra.mxu0 %v569_v15 }
 0x1f5   : > { %685 = vmatpush.msrb.mxu2 %v469_v30  ;;  %705 = vmatpush.msrb.mxu3 %v501_v31 }
 0x1f6   : > { %720 = vmatpush.msra.mxu1 %v543_v58  ;;  %744 = vmatpush.msra.mxu0 %v567_v19 }
 0x1f7   : > { %686 = vmatpush.msrb.mxu2 %v467_v34  ;;  %706 = vmatpush.msrb.mxu3 %v499_v35 }
 0x1f8   : > { %721 = vmatpush.msra.mxu1 %v541_v62  ;;  %745 = vmatpush.msra.mxu0 %v565_v23  ;;  %v440_v62 = vmul.f32 %v1003_v38, %v439_v53 }
 0x1f9   : > { %687 = vmatpush.msrb.mxu2 %v465_v36  ;;  %707 = vmatpush.msrb.mxu3 %v497_v37 }
 0x1fa   : > { %722 = vmatpush.msra.mxu1 %v539_v6  ;;  %746 = vmatpush.msra.mxu0 %v563_v28  ;;  %v441_v15 = vadd.f32 %v1003_v38, %v440_v62 }
 0x1fc   : > { %723 = vmatpush.msra.mxu1 %v537_v14  ;;  %747 = vmatpush.msra.mxu0 %v561_v33 }
 0x1fe   : > { %724 = vmatpush.msra.mxu1 %v535_v18 }
 0x200   : > { %725 = vmatpush.msra.mxu1 %v533_v22 }
 0x202   : > { %726 = vmatpush.msra.mxu1 %v531_v27 }
 0x204   : > { %727 = vmatpush.msra.mxu1 %v529_v32 }
 0x235   : > { %v392_v24 = vpop.permute.xlu2 %391 }
 0x236   : > { %v1342_v40 = vmul.f32 %v392_v24, %v1288_v0  ;;  %v1345_v41 = vmul.f32 %v392_v24, %v1290_v1  ;;  %v443_v24 = vsel %vm442_vm11, %v1003_v38, %v441_v15 }
 0x245   : > { %v410_v39 = vpop.permute.xlu2 %409 }
 0x246   : > { %v1360_v0 = vmul.f32 %v410_v39, %v1306_v9  ;;  %v1363_v1 = vmul.f32 %v410_v39, %v1308_v10 }
 0x24c   : > { %v404_v42 = vpop.permute.xlu1 %403  ;;  %v398_v43 = vpop.permute.xlu0 %397 }
 0x24d   : > { %v1348_v44 = vmul.f32 %v404_v42, %v1292_v2  ;;  %v1351_v45 = vmul.f32 %v404_v42, %v1298_v5  ;;  %v1354_v46 = vmul.f32 %v398_v43, %v1302_v7  ;;  %v1357_v47 = vmul.f32 %v398_v43, %v1304_v8 }
 0x24f   : > { %v446_v2 = vmax.f32 %v1342_v40, %v1348_v44  ;;  %v455_v5 = vmax.f32 %v1345_v41, %v1351_v45  ;;  %v419_v7 = vadd.f32 %v1354_v46, %v1342_v40  ;;  %v428_v8 = vadd.f32 %v1357_v47, %v1345_v41 }
 0x250   : > { %v447_v9 = vmax.f32 %v1354_v46, %v1360_v0  ;;  %v456_v10 = vmax.f32 %v1357_v47, %v1363_v1 }
 0x251   : > { %v420_v49 = vadd.f32 %v419_v7, %v1348_v44  ;;  %v429_v50 = vadd.f32 %v428_v8, %v1351_v45 }
 0x252   : > { %v448_v51 = vmax.f32 %v446_v2, %v447_v9  ;;  %v457_v52 = vmax.f32 %v455_v5, %v456_v10 }
 0x253   : > { %v421_v54 = vadd.f32 %v420_v49, %v1360_v0  ;;  %v430_v55 = vadd.f32 %v429_v50, %v1363_v1 }
 0x254   : > { %v449_v56 = vrot.slane %v448_v51, 4  ;;  %v458_v57 = vrot.slane %v457_v52, 4 }
 0x255   : > { %v422_v58 = vrot.slane %v421_v54, 4  ;;  %v431_v59 = vrot.slane %v430_v55, 4 }
 0x256   : > { %v450_v60 = vmax.f32 %v448_v51, %v449_v56  ;;  %v459_v61 = vmax.f32 %v457_v52, %v458_v57 }
 0x257   : > { %v423_v63 = vadd.f32 %v422_v58, %v421_v54  ;;  %v432_v3 = vadd.f32 %v431_v59, %v430_v55 }
 0x258   : > { %v451_v4 = vrot.slane %v450_v60, 2  ;;  %v460_v6 = vrot.slane %v459_v61, 2 }
 0x259   : > { %v424_v11 = vrot.slane %v423_v63, 2  ;;  %v433_v12 = vrot.slane %v432_v3, 2 }
 0x25a   : > { %v452_v13 = vmax.f32 %v450_v60, %v451_v4  ;;  %v461_v14 = vmax.f32 %v459_v61, %v460_v6 }
 0x25b   : > { %v425_v16 = vadd.f32 %v424_v11, %v423_v63  ;;  %v434_v17 = vadd.f32 %v433_v12, %v432_v3 }
 0x25c   : > { %v453_v18 = vrot.slane %v452_v13, 1  ;;  %v462_v19 = vrot.slane %v461_v14, 1 }
 0x25d   : > { %v426_v20 = vrot.slane %v425_v16, 1  ;;  %v435_v21 = vrot.slane %v434_v17, 1 }
 0x25e   : > { %v454_v22 = vmax.f32 %v452_v13, %v453_v18  ;;  %v463_v23 = vmax.f32 %v461_v14, %v462_v19 }
 0x25f   : > { %v427_v25 = vadd.f32 %v426_v20, %v425_v16  ;;  %v436_v26 = vadd.f32 %v435_v21, %v434_v17 }
 0x260   : > { %648 = vmatmul.f32.vlgmr.msrb.gmra.mxu1 %v454_v22  ;;  %668 = vmatmul.f32.vlgmr.msrb.gmra.mxu0 %v463_v23 }
 0x261   : > { %v444_v27 = vmul.f32 %v443_v24, %v427_v25  ;;  %v445_v28 = vmul.f32 %v443_v24, %v436_v26 }
 0x263   : > { %608 = vmatmul.f32.vlgmr.msra.gmra.mxu2 %v444_v27  ;;  %628 = vmatmul.f32.vlgmr.msra.gmra.mxu3 %v445_v28 }
 0x268   : > { %728 = vmatmul.f32.vlgmr.msra.gmra.mxu1 %v454_v22  ;;  %748 = vmatmul.f32.vlgmr.msra.gmra.mxu0 %v463_v23 }
 0x26b   : > { %688 = vmatmul.f32.vlgmr.msrb.gmra.mxu2 %v444_v27  ;;  %708 = vmatmul.f32.vlgmr.msrb.gmra.mxu3 %v445_v28 }
 0x2dd   : > { %v649_v29 = vpop.f32.mrf.mxu1  ;;  %v669_v33 = vpop.f32.mrf.mxu0 }
 0x2e5   : > { %v729_v42 = vpop.f32.mrf.mxu1  ;;  %v749_v48 = vpop.f32.mrf.mxu0 }
 0x2e6   : > { %v609_v30 = vpop.f32.mrf.mxu2  ;;  %v629_v31 = vpop.f32.mrf.mxu3 }
 0x2e7   : > { %v630_v32 = vadd.f32 %v629_v31, %v609_v30 }
 0x2e9   : > { %v650_v34 = vadd.f32 %v649_v29, %v630_v32 }
 0x2eb   : > { %v670_v35 = vadd.f32 %v669_v33, %v650_v34 }
 0x2ed   : > { %v922_v36 = vmul.f32 -1.442695, %v670_v35 }
 0x2ee   : > { %v689_v37 = vpop.f32.mrf.mxu2  ;;  %v709_v38 = vpop.f32.mrf.mxu3 }
 0x2ef   : > { %1004 = vpow2.f32 %v922_v36  ;;  %v710_v39 = vadd.f32 %v709_v38, %v689_v37 }
 0x2f1   : > { %v730_v43 = vadd.f32 %v729_v42, %v710_v39 }
 0x2f3   : > { %v750_v2 = vadd.f32 %v749_v48, %v730_v43 }
 0x2f5   : > { %v1005_v5 = vpop.eup %1004  ;;  %v923_v7 = vmul.f32 -1.442695, %v750_v2 }
 0x2f6   : > { %v758_v8 = vadd.f32 1.0, %v1005_v5 }
 0x2f7   : > { %1006 = vpow2.f32 %v923_v7 }
 0x2f8   : > { %1008 = vrcp.f32 %v758_v8  ;;  %v771_v52 = vand.u32 2147483648, %v758_v8  ;;  %v769_v54 = vand.u32 2147483647, %v758_v8  ;;  %vm765_vm13 = vweird.f32 %v758_v8 }
 0x2fa   : > { %v772_v57 = vor.u32 1.1754944e-38, %v771_v52  ;;  %vm770_vm15 = vcmp.eq.f32.partialorder %v769_v54, 8.507059e+37 }
 0x2fd   : > { %v1007_v9 = vpop.eup %1006 }
 0x2fe   : > { %v1009_v10 = vpop.eup %1008  ;;  %v759_v49 = vadd.f32 1.0, %v1007_v9 }
 0x2ff   : > { %v761_v50 = vmul.f32 %v1009_v10, %v758_v8  ;;  %vm766_vm12 = vweird.f32 %v1009_v10 }
 0x300   : > { %1010 = vrcp.f32 %v759_v49  ;;  %vm767_vm14 = vmor %vm765_vm13, %vm766_vm12  ;;  %v786_v6 = vand.u32 2147483648, %v759_v49  ;;  %v784_v13 = vand.u32 2147483647, %v759_v49  ;;  %vm780_vm1 = vweird.f32 %v759_v49 }
 0x301   : > { %v762_v51 = vsub.f32 1.0, %v761_v50 }
 0x302   : > { %vm785_vm3 = vcmp.eq.f32.partialorder %v784_v13, 8.507059e+37 }
 0x303   : > { %v763_v53 = vmul.f32 %v1009_v10, %v762_v51 }
 0x305   : > { %v764_v55 = vadd.f32 %v1009_v10, %v763_v53 }
 0x306   : > { %v1011_v56 = vpop.eup %1010 }
 0x307   : > { %v768_v58 = vsel %vm767_vm14, %v1009_v10, %v764_v55  ;;  %v776_v59 = vmul.f32 %v1011_v56, %v759_v49  ;;  %vm781_vm0 = vweird.f32 %v1011_v56 }
 0x308   : > { %v773_v60 = vsel %vm770_vm15, %v772_v57, %v768_v58  ;;  %vm782_vm2 = vmor %vm780_vm1, %vm781_vm0 }
 0x309   : > { %v790_v61 = vperm.slane %v773_v60, 0  ;;  %v777_v62 = vsub.f32 1.0, %v776_v59 }
 0x30b   : > { %v792_v63 = vmul.f32 %v790_v61, %v1342_v40  ;;  %v794_v3 = vmul.f32 %v790_v61, %v1354_v46  ;;  %v796_v4 = vmul.f32 %v790_v61, %v1348_v44  ;;  %v798_v11 = vmul.f32 %v790_v61, %v1360_v0 }
 0x30c   : > { %v778_v12 = vmul.f32 %v1011_v56, %v777_v62  ;;  %v787_v40 = vor.u32 1.1754944e-38, %v786_v6 }
 0x30d   : > { %800 = vst [vmem:[%s234_s12] sm:$0xff] %v792_v63 }
 0x30e   : > { %802 = vst [vmem:[%s234_s12 + $0x10] sm:$0xff] %v794_v3  ;;  %v779_v14 = vadd.f32 %v1011_v56, %v778_v12 }
 0x30f   : > { %804 = vst [vmem:[%s234_s12 + $0x20] sm:$0xff] %v796_v4 }
 0x310   : > { %806 = vst [vmem:[%s234_s12 + $0x30] sm:$0xff] %v798_v11  ;;  %v783_v46 = vsel %vm782_vm2, %v1011_v56, %v779_v14 }
 0x311   : > { %v788_v44 = vsel %vm785_vm3, %v787_v40, %v783_v46 }
 0x312   : > { %v791_v0 = vperm.slane %v788_v44, 0 }
 0x314   : > { %v793_v15 = vmul.f32 %v791_v0, %v1345_v41  ;;  %v795_v16 = vmul.f32 %v791_v0, %v1357_v47  ;;  %v797_v17 = vmul.f32 %v791_v0, %v1351_v45  ;;  %v799_v18 = vmul.f32 %v791_v0, %v1363_v1 }
 0x316   : > { %801 = vst [vmem:[%s234_s12 + $0x8] sm:$0xff] %v793_v15 }
 0x317   : > { %803 = vst [vmem:[%s234_s12 + $0x18] sm:$0xff] %v795_v16 }
 0x318   : > { %805 = vst [vmem:[%s234_s12 + $0x28] sm:$0xff] %v797_v17 }
 0x319   : > { %807 = vst [vmem:[%s234_s12 + $0x38] sm:$0xff] %v799_v18 }
 0x31a   : > { %1099 = shalt.err (!%p1096_p10)
}
 0x31b   : > { %s1148_s10 = smov 256   ;;  %s1149_s11 = smov 16  }
 0x31c   : > { %937 = dma.vmem_to_hbm [thread:$0]  (%p1244_p3), %s822_s21, 1024, %s824_s24, %s809_s19, %s1148_s10, %s1148_s10, %s1149_s11  }
 0x31d PF: > { %s838_s13 = sand.u32 1, %s1130_s15   ;;  %p1434_p12 = scmp.ge.s32.totalorder %s1142_s18, 2 }
 0x31e   : > { %s839_s12 = scalar_lea.sflag [#allocation4], %s838_s13 }
 0x31f   : > { %p948_p13 = pnand %p1434_p12, %p1210_p6 }
 0x321   : > { %p949_p0 = pneg %p948_p13 }
 0x323   : > { %1125 = dma.done.wait (%p949_p0), %s839_s12, 1024  }
 0x324   : > { %1127 = vsyncadd (%p949_p0), %s839_s12, 4294966272  ;;  %p18_p5 = scmp.ge.s32.totalorder %s1228_s29, 4   ;;  %s1435_s15 = smov %s1134_s16 }
 0x325   : > { %s1436_s16 = smov %s1138_s17  ;;  %s1437_s17 = smov %s1240_s8 }
 0x326   : > { %s1438_s18 = smov %s1228_s29  ;;  %20 = sbr.rel (!%p18_p5) target bundleno = 6 (0x6), region = 85 }
 0x32b   :  { %845 = vsyncpa [#allocation3], 1 }
 0x32c   :  { %847 = vsyncpa [#allocation3 + $0x1], 1 }
 0x32d   :  { %848 = vsyncpa [#allocation6], 1 }
 0x32e   :  { %849 = vsyncpa [#allocation4], 1 }
 0x32f   :  { %851 = vsyncpa [#allocation4 + $0x1], 1 }

</bundles_post_ra>
